<compile_context>
chip_gen: v7x
topology: tpu7x:2x2x1
jax: 0.10.0
libtpu: 0.0.40
codegen_flags: <defaults>
</compile_context>

<pallas_src>
import functools

import jax
import jax.numpy as jnp
from jax.experimental import pallas as pl
from jax.experimental.pallas import tpu as pltpu


# TODO(synk): construct_adj_optimized is not defined in the provided source; this is the
# standard STSGCN localized spatial-temporal graph (per-step adjacency on the diagonal
# blocks, identity coupling between adjacent time blocks, unit self-loops, no
# normalization).  Used by the dense reference and mirrored by _build_dense_adj below.
def construct_adj_dense(adj):
    B, S, N, _ = adj.shape
    big = jnp.zeros((B, S * N, S * N), adj.dtype)
    for t in range(S):
        big = big.at[:, t * N:(t + 1) * N, t * N:(t + 1) * N].set(adj[:, t])
    eye = jnp.eye(N, dtype=adj.dtype)
    for t in range(S - 1):
        big = big.at[:, t * N:(t + 1) * N, (t + 1) * N:(t + 2) * N].set(eye)
        big = big.at[:, (t + 1) * N:(t + 2) * N, t * N:(t + 1) * N].set(eye)
    idx = jnp.arange(S * N)
    big = big.at[:, idx, idx].set(jnp.asarray(1.0, adj.dtype))
    return big


def _round_up(v, m):
    return (v + m - 1) // m * m


def _build_dense_adj(adj, mask, n, n_pad):
    """(B,3,N,N) per-step blocks -> (B, 3*n_pad, 3*n_pad) localized ST adjacency with unit
    self loops, identity couplings between adjacent time blocks and the optional mask
    folded in.  Padded vertices get all-zero rows/columns (their outputs are dropped)."""
    b = adj.shape[0]
    f32 = jnp.float32
    eye_b = jnp.eye(n, dtype=bool)
    blocks = jnp.where(eye_b, jnp.asarray(1.0, f32), adj.astype(f32))     # unit self loops
    eye = jnp.eye(n, dtype=f32)
    big = jnp.zeros((b, 3 * n, 3 * n), f32)
    for t in range(3):
        big = big.at[:, t * n:(t + 1) * n, t * n:(t + 1) * n].set(blocks[:, t])
    for t in range(2):
        big = big.at[:, t * n:(t + 1) * n, (t + 1) * n:(t + 2) * n].set(eye)
        big = big.at[:, (t + 1) * n:(t + 2) * n, t * n:(t + 1) * n].set(eye)
    if mask is not None:
        big = big * mask.astype(f32)
    if n_pad != n:
        bigp = jnp.zeros((b, 3 * n_pad, 3 * n_pad), f32)
        for ti in range(3):
            for tj in range(3):
                bigp = bigp.at[:, ti * n_pad:ti * n_pad + n,
                               tj * n_pad:tj * n_pad + n].set(
                    big[:, ti * n:(ti + 1) * n, tj * n:(tj + 1) * n])
        big = bigp
    return big


def _stsgcm_kernel(adj_ref, x_ref, *rest, n_pad, bt, layer_dims):
    """One grid step = one tile of `bt` batch elements; the full layer stack runs here.

    adj_ref (bt, 3*n_pad, 3*n_pad) bf16  dense localized ST adjacency (mask folded in)
    x_ref   (bt, 3*n_pad, Cin0)    bf16  batch-major input features
    rest    = L weights (Cin_l, 2*Cout_l) bf16, L biases (1, 2*Cout_l) f32, out ref
    out_ref (bt, n_pad, Cout)      f32   max over layers of the middle-block crop
    """
    num_layers = len(layer_dims)
    w_refs = rest[:num_layers]
    b_refs = rest[num_layers:2 * num_layers]
    o_ref = rest[2 * num_layers]

    f32 = jnp.float32
    tn = 3 * n_pad
    adj = adj_ref[...]
    x = x_ref[...]

    acc = None
    for l, (cin, cout) in enumerate(layer_dims):
        # Batched graph aggregation: one MXU matmul over the whole batch tile.
        h = jnp.einsum('bnm,bmc->bnc', adj, x, preferred_element_type=f32)
        # Fused value|gate FC: one stacked matmul; value/gate split is a static lane slice.
        h2 = h.astype(jnp.bfloat16).reshape(bt * tn, cin)
        z = jnp.dot(h2, w_refs[l][...], preferred_element_type=f32) + b_refs[l][...]
        act = z[:, :cout] * jax.nn.sigmoid(z[:, cout:])            # f32 (bt*3N, Cout)
        act3 = act.reshape(bt, tn, cout)
        mid = act3[:, n_pad:2 * n_pad, :]                          # middle time block crop
        acc = mid if acc is None else jnp.maximum(acc, mid)
        x = act3.astype(jnp.bfloat16)                              # next layer input (VMEM)
    o_ref[...] = acc


def _vmem_bytes_per_step(bt, n_pad, layer_dims, cin0, cout_last):
    tn = 3 * n_pad
    adj = bt * tn * tn * 2
    x = bt * tn * cin0 * 2
    out = bt * n_pad * cout_last * 4
    wb = sum(cin * 2 * cout * 2 + 2 * cout * 4 for cin, cout in layer_dims)
    max_w = max(max(cin, 2 * cout) for cin, cout in layer_dims)
    temps = 4 * bt * tn * max_w * 4            # h / z / act f32 temporaries (generous)
    return 2 * (adj + x + out) + 2 * wb + temps


def _choose_tiling(b, n_pad, layer_dims, cin0, cout_last):
    """Generation-aware batch tile + vmem limit (v5e/v6e 128 MiB, v7x 64 MiB per TC)."""
    try:
        vmem_cap = int(pltpu.get_tpu_info().vmem_capacity_bytes)
    except Exception:
        vmem_cap = 64 * 2**20                  # conservative fallback (v7x per-TC)
    budget = int(0.45 * vmem_cap)

    tn = 3 * n_pad
    bt_cap = min(b, max(1, 2048 // tn))        # ~512-2048 rows per step is plenty
    if b >= 2:
        bt_cap = min(bt_cap, max(1, (b + 1) // 2))   # keep >=2 grid steps (v7x megacore)
    bt = 1
    for cand in range(1, bt_cap + 1):
        if _vmem_bytes_per_step(cand, n_pad, layer_dims, cin0, cout_last) <= budget:
            bt = cand
    est = _vmem_bytes_per_step(bt, n_pad, layer_dims, cin0, cout_last)
    vmem_limit = int(min(int(0.75 * vmem_cap), max(32 * 2**20, int(1.5 * est))))
    return bt, vmem_limit


def stsgcm_forward(x, adj, weights, biases, mask=None, *, num_vertices):
    """STSGCM forward.

    x: (3N, B, Cin) f32, adj: (B, 3, N, N) f32, mask: optional (B, 3N, 3N) f32.
    weights[i]: (2*out_dims[i], prev_dim), biases[i]: (2*out_dims[i],).
    returns: (N, B, out_dims[-1]) f32
    """
    n = num_vertices
    three_n, b, cin0 = x.shape
    assert three_n == 3 * n

    out_dims = [w.shape[0] // 2 for w in weights]
    cout_last = out_dims[-1]
    assert all(d == cout_last for d in out_dims), "layer-wise max needs equal out_dims"

    n_pad = _round_up(n, 16)                   # bf16 sublane pack
    tn = 3 * n_pad

    # Dense localized ST adjacency (mask folded in) -- built once, reused by every layer.
    big = _build_dense_adj(adj, mask, n, n_pad).astype(jnp.bfloat16)      # (B, 3Np, 3Np)

    # Batch-major features with padded vertices; bf16 MXU operands.
    xb = jnp.transpose(x, (1, 0, 2)).reshape(b, 3, n, cin0)
    if n_pad != n:
        xb = jnp.pad(xb, ((0, 0), (0, 0), (0, n_pad - n), (0, 0)))
    xb = xb.reshape(b, tn, cin0).astype(jnp.bfloat16)

    # Per-layer FC weights: fused value|gate (Cin, 2*Cout) bf16 + f32 bias.
    w_list, b_list, cins = [], [], []
    prev = cin0
    for w, bia in zip(weights, biases):
        two_cout, cin = w.shape
        assert cin == prev
        cins.append(cin)
        w_list.append(jnp.transpose(w).astype(jnp.bfloat16))              # (Cin, 2Cout)
        b_list.append(bia.reshape(1, two_cout).astype(jnp.float32))
        prev = two_cout // 2
    layer_dims = tuple(zip(cins, out_dims))

    bt, vmem_limit = _choose_tiling(b, n_pad, layer_dims, cin0, cout_last)

    # Ragged batch handled by padding (not by degenerating to bt=1).
    b_pad = _round_up(b, bt)
    if b_pad != b:
        big = jnp.pad(big, ((0, b_pad - b), (0, 0), (0, 0)))
        xb = jnp.pad(xb, ((0, b_pad - b), (0, 0), (0, 0)))

    grid = (b_pad // bt,)
    kernel = functools.partial(_stsgcm_kernel, n_pad=n_pad, bt=bt, layer_dims=layer_dims)

    in_specs = [
        pl.BlockSpec((bt, tn, tn), lambda i: (i, 0, 0)),
        pl.BlockSpec((bt, tn, cin0), lambda i: (i, 0, 0)),
    ]
    for (cin, cout) in layer_dims:             # constant index maps -> VMEM-resident
        in_specs.append(pl.BlockSpec((cin, 2 * cout), lambda i: (0, 0)))
    for (cin, cout) in layer_dims:
        in_specs.append(pl.BlockSpec((1, 2 * cout), lambda i: (0, 0)))

    out = pl.pallas_call(
        kernel,
        out_shape=jax.ShapeDtypeStruct((b_pad, n_pad, cout_last), jnp.float32),
        grid_spec=pltpu.PrefetchScalarGridSpec(
            num_scalar_prefetch=0,
            grid=grid,
            in_specs=in_specs,
            out_specs=pl.BlockSpec((bt, n_pad, cout_last), lambda i: (i, 0, 0)),
        ),
        compiler_params=pltpu.CompilerParams(
            dimension_semantics=("parallel",),
            vmem_limit_bytes=vmem_limit,
        ),
    )(big, xb, *w_list, *b_list)

    out = out[:b, :n, :]                                                  # (B, N, Cout)
    return jnp.transpose(out, (1, 0, 2))                                  # (N, B, Cout)


# TODO(synk): only the gated 'GLU'/'GELU' activation path (the STSGCM default) is
# implemented; the 'relu' single-width-FC variant of gcn_operation has no kernel here.


def _stsgcm_reference(x, adj, weights, biases, mask=None, *, num_vertices):
    n = num_vertices
    big = construct_adj_dense(adj)
    if mask is not None:
        big = big * mask
    h = x
    crops = []
    for w, bia in zip(weights, biases):
        agg = jnp.einsum('bnm,mbc->nbc', big, h)
        z = jnp.einsum('nbc,oc->nbo', agg, w) + bia
        cout = w.shape[0] // 2
        h = z[..., :cout] * jax.nn.sigmoid(z[..., cout:])
        crops.append(h[n:2 * n])
    return jnp.max(jnp.stack(crops, axis=0), axis=0)                      # (N, B, Cout)


if __name__ == "__main__":
    def make_case(key, B, N, Cin, out_dims):
        three_n = 3 * N
        kx, ka, km, kw = jax.random.split(key, 4)
        x = jax.random.normal(kx, (three_n, B, Cin), dtype=jnp.float32)
        adj = jax.random.uniform(ka, (B, 3, N, N), dtype=jnp.float32)
        mask = jax.random.uniform(km, (B, three_n, three_n), dtype=jnp.float32)
        weights, biases = [], []
        prev = Cin
        wkeys = jax.random.split(kw, 2 * len(out_dims))
        for i, od in enumerate(out_dims):
            bound = 1.0 / (prev ** 0.5)          # torch nn.Linear default init range
            weights.append(jax.random.uniform(wkeys[2 * i], (2 * od, prev), jnp.float32,
                                              minval=-bound, maxval=bound))
            biases.append(jax.random.uniform(wkeys[2 * i + 1], (2 * od,), jnp.float32,
                                             minval=-bound, maxval=bound))
            prev = od
        return x, adj, mask, weights, biases

    fwd = jax.jit(stsgcm_forward, static_argnames=("num_vertices",))

    cases = [
        (2, 16, 32, [32, 32]),    # aligned N, even B
        (3, 10, 24, [16, 16]),    # N not sublane-aligned + ragged B (exercises padding)
    ]
    key = jax.random.PRNGKey(0)
    for (B, N, Cin, out_dims) in cases:
        key, sub = jax.random.split(key)
        x, adj, mask, weights, biases = make_case(sub, B, N, Cin, out_dims)
        for use_mask in (None, mask):
            out = jax.block_until_ready(
                fwd(x, adj, weights, biases, mask=use_mask, num_vertices=N))
            ref = _stsgcm_reference(x, adj, weights, biases, mask=use_mask,
                                    num_vertices=N)
            assert out.shape == (N, B, out_dims[-1]), out.shape
            err = float(jnp.max(jnp.abs(out - ref)))
            scale = float(jnp.max(jnp.abs(ref))) + 1e-6
            # bf16 MXU operands / bf16 inter-layer activations (f32 accumulation) ->
            # allow a few percent vs the f32 reference.
            assert err <= 0.05 * scale + 0.05, f"mismatch: max err {err} vs scale {scale}"

    print("KERNEL_OK")
</pallas_src>

<mosaic_0001>
module attributes {stable_mosaic.version = 11 : i64} {
  func.func @_stsgcm_kernel(%arg0: i32, %arg1: memref<1x48x48xbf16, #tpu.memory_space<vmem>>, %arg2: memref<1x48x32xbf16, #tpu.memory_space<vmem>>, %arg3: memref<32x64xbf16, #tpu.memory_space<vmem>>, %arg4: memref<32x64xbf16, #tpu.memory_space<vmem>>, %arg5: memref<1x64xf32, #tpu.memory_space<vmem>>, %arg6: memref<1x64xf32, #tpu.memory_space<vmem>>, %arg7: memref<1x16x32xf32, #tpu.memory_space<vmem>>) attributes {dimension_semantics = [#tpu.dimension_semantics<parallel>], iteration_bounds = array<i64: 2>, scalar_prefetch = 0 : i64, scratch_operands = 0 : i64, tpu.core_type = #tpu.core_type<tc>, window_params = [{transform_indices = @transform_0, window_bounds = array<i64: 1, 48, 48>}, {transform_indices = @transform_1, window_bounds = array<i64: 1, 48, 32>}, {pipeline_mode = #tpu.pipeline_mode<synchronous>, transform_indices = @transform_2, window_bounds = array<i64: 32, 64>}, {pipeline_mode = #tpu.pipeline_mode<synchronous>, transform_indices = @transform_3, window_bounds = array<i64: 32, 64>}, {pipeline_mode = #tpu.pipeline_mode<synchronous>, transform_indices = @transform_4, window_bounds = array<i64: 1, 64>}, {pipeline_mode = #tpu.pipeline_mode<synchronous>, transform_indices = @transform_5, window_bounds = array<i64: 1, 64>}, {transform_indices = @transform_6, window_bounds = array<i64: 1, 16, 32>}]} {
    %c0 = arith.constant 0 : index
    %c0_0 = arith.constant 0 : index
    %c0_1 = arith.constant 0 : index
    %0 = vector.load %arg1[%c0, %c0_0, %c0_1] : memref<1x48x48xbf16, #tpu.memory_space<vmem>>, vector<1x48x48xbf16>
    %c0_2 = arith.constant 0 : index
    %c0_3 = arith.constant 0 : index
    %c0_4 = arith.constant 0 : index
    %1 = vector.load %arg2[%c0_2, %c0_3, %c0_4] : memref<1x48x32xbf16, #tpu.memory_space<vmem>>, vector<1x48x32xbf16>
    "tpu.trace_start"() <{level = 10 : i32, message = "bnm,bmc->bnc"}> : () -> ()
    %cst = arith.constant dense<0.000000e+00> : vector<1x48x32xf32>
    %2 = tpu.matmul %0, %1, %cst {dimension_numbers = #tpu.dot_dimension_numbers<[2], [1], [1], [2], [0, 0, 0, 1, 1, 2], [0], [0]>} : vector<1x48x48xbf16>, vector<1x48x32xbf16>, vector<1x48x32xf32> -> vector<1x48x32xf32>
    "tpu.trace_stop"() : () -> ()
    %3 = arith.truncf %2 : vector<1x48x32xf32> to vector<1x48x32xbf16>
    %4 = vector.shape_cast %3 : vector<1x48x32xbf16> to vector<48x32xbf16>
    %c0_5 = arith.constant 0 : index
    %c0_6 = arith.constant 0 : index
    %5 = vector.load %arg3[%c0_5, %c0_6] : memref<32x64xbf16, #tpu.memory_space<vmem>>, vector<32x64xbf16>
    %cst_7 = arith.constant dense<0.000000e+00> : vector<48x64xf32>
    %6 = tpu.matmul %4, %5, %cst_7 {dimension_numbers = #tpu.dot_dimension_numbers<[1], [0], [0], [1], [0, 0, 1, 1], [], []>} : vector<48x32xbf16>, vector<32x64xbf16>, vector<48x64xf32> -> vector<48x64xf32>
    %c0_8 = arith.constant 0 : index
    %c0_9 = arith.constant 0 : index
    %7 = vector.load %arg5[%c0_8, %c0_9] : memref<1x64xf32, #tpu.memory_space<vmem>>, vector<1x64xf32>
    %8 = vector.broadcast %7 : vector<1x64xf32> to vector<48x64xf32>
    %9 = arith.addf %6, %8 : vector<48x64xf32>
    %10 = vector.extract_strided_slice %9 {offsets = [0, 0], sizes = [48, 32], strides = [1, 1]} : vector<48x64xf32> to vector<48x32xf32>
    %11 = vector.extract_strided_slice %9 {offsets = [0, 32], sizes = [48, 32], strides = [1, 1]} : vector<48x64xf32> to vector<48x32xf32>
    %12 = arith.negf %11 : vector<48x32xf32>
    %13 = math.exp %12 : vector<48x32xf32>
    %cst_10 = arith.constant 1.000000e+00 : f32
    %14 = vector.broadcast %cst_10 : f32 to vector<48x32xf32>
    %15 = arith.addf %14, %13 : vector<48x32xf32>
    %16 = arith.divf %14, %15 : vector<48x32xf32>
    %17 = arith.mulf %10, %16 : vector<48x32xf32>
    %18 = vector.shape_cast %17 : vector<48x32xf32> to vector<1x48x32xf32>
    %19 = vector.extract_strided_slice %18 {offsets = [0, 16, 0], sizes = [1, 16, 32], strides = [1, 1, 1]} : vector<1x48x32xf32> to vector<1x16x32xf32>
    %20 = arith.truncf %18 : vector<1x48x32xf32> to vector<1x48x32xbf16>
    "tpu.trace_start"() <{level = 10 : i32, message = "bnm,bmc->bnc"}> : () -> ()
    %cst_11 = arith.constant dense<0.000000e+00> : vector<1x48x32xf32>
    %21 = tpu.matmul %0, %20, %cst_11 {dimension_numbers = #tpu.dot_dimension_numbers<[2], [1], [1], [2], [0, 0, 0, 1, 1, 2], [0], [0]>} : vector<1x48x48xbf16>, vector<1x48x32xbf16>, vector<1x48x32xf32> -> vector<1x48x32xf32>
    "tpu.trace_stop"() : () -> ()
    %22 = arith.truncf %21 : vector<1x48x32xf32> to vector<1x48x32xbf16>
    %23 = vector.shape_cast %22 : vector<1x48x32xbf16> to vector<48x32xbf16>
    %c0_12 = arith.constant 0 : index
    %c0_13 = arith.constant 0 : index
    %24 = vector.load %arg4[%c0_12, %c0_13] : memref<32x64xbf16, #tpu.memory_space<vmem>>, vector<32x64xbf16>
    %cst_14 = arith.constant dense<0.000000e+00> : vector<48x64xf32>
    %25 = tpu.matmul %23, %24, %cst_14 {dimension_numbers = #tpu.dot_dimension_numbers<[1], [0], [0], [1], [0, 0, 1, 1], [], []>} : vector<48x32xbf16>, vector<32x64xbf16>, vector<48x64xf32> -> vector<48x64xf32>
    %c0_15 = arith.constant 0 : index
    %c0_16 = arith.constant 0 : index
    %26 = vector.load %arg6[%c0_15, %c0_16] : memref<1x64xf32, #tpu.memory_space<vmem>>, vector<1x64xf32>
    %27 = vector.broadcast %26 : vector<1x64xf32> to vector<48x64xf32>
    %28 = arith.addf %25, %27 : vector<48x64xf32>
    %29 = vector.extract_strided_slice %28 {offsets = [0, 0], sizes = [48, 32], strides = [1, 1]} : vector<48x64xf32> to vector<48x32xf32>
    %30 = vector.extract_strided_slice %28 {offsets = [0, 32], sizes = [48, 32], strides = [1, 1]} : vector<48x64xf32> to vector<48x32xf32>
    %31 = arith.negf %30 : vector<48x32xf32>
    %32 = math.exp %31 : vector<48x32xf32>
    %cst_17 = arith.constant 1.000000e+00 : f32
    %33 = vector.broadcast %cst_17 : f32 to vector<48x32xf32>
    %34 = arith.addf %33, %32 : vector<48x32xf32>
    %35 = arith.divf %33, %34 : vector<48x32xf32>
    %36 = arith.mulf %29, %35 : vector<48x32xf32>
    %37 = vector.shape_cast %36 : vector<48x32xf32> to vector<1x48x32xf32>
    %38 = vector.extract_strided_slice %37 {offsets = [0, 16, 0], sizes = [1, 16, 32], strides = [1, 1, 1]} : vector<1x48x32xf32> to vector<1x16x32xf32>
    %39 = arith.maximumf %19, %38 : vector<1x16x32xf32>
    %c0_18 = arith.constant 0 : index
    %c0_19 = arith.constant 0 : index
    %c0_20 = arith.constant 0 : index
    %40 = vector.load %arg7[%c0_18, %c0_19, %c0_20] : memref<1x16x32xf32, #tpu.memory_space<vmem>>, vector<1x16x32xf32>
    tpu.vector_store %arg7[%c0_18, %c0_19, %c0_20], %39 {strides = array<i32>} : memref<1x16x32xf32, #tpu.memory_space<vmem>>, vector<1x16x32xf32>,
    return
  }
  func.func @transform_0(%arg0: i32) -> (i32, i32, i32) {
    %c0_i32 = arith.constant 0 : i32
    %c0_i32_0 = arith.constant 0 : i32
    %c0_i32_1 = arith.constant 0 : i32
    return %arg0, %c0_i32, %c0_i32_0 : i32, i32, i32
  }
  func.func @transform_1(%arg0: i32) -> (i32, i32, i32) {
    %c0_i32 = arith.constant 0 : i32
    %c0_i32_0 = arith.constant 0 : i32
    %c0_i32_1 = arith.constant 0 : i32
    return %arg0, %c0_i32, %c0_i32_0 : i32, i32, i32
  }
  func.func @transform_2(%arg0: i32) -> (i32, i32) {
    %c0_i32 = arith.constant 0 : i32
    %c0_i32_0 = arith.constant 0 : i32
    %c0_i32_1 = arith.constant 0 : i32
    return %c0_i32, %c0_i32_0 : i32, i32
  }
  func.func @transform_3(%arg0: i32) -> (i32, i32) {
    %c0_i32 = arith.constant 0 : i32
    %c0_i32_0 = arith.constant 0 : i32
    %c0_i32_1 = arith.constant 0 : i32
    return %c0_i32, %c0_i32_0 : i32, i32
  }
  func.func @transform_4(%arg0: i32) -> (i32, i32) {
    %c0_i32 = arith.constant 0 : i32
    %c0_i32_0 = arith.constant 0 : i32
    %c0_i32_1 = arith.constant 0 : i32
    return %c0_i32, %c0_i32_0 : i32, i32
  }
  func.func @transform_5(%arg0: i32) -> (i32, i32) {
    %c0_i32 = arith.constant 0 : i32
    %c0_i32_0 = arith.constant 0 : i32
    %c0_i32_1 = arith.constant 0 : i32
    return %c0_i32, %c0_i32_0 : i32, i32
  }
  func.func @transform_6(%arg0: i32) -> (i32, i32, i32) {
    %c0_i32 = arith.constant 0 : i32
    %c0_i32_0 = arith.constant 0 : i32
    %c0_i32_1 = arith.constant 0 : i32
    return %arg0, %c0_i32, %c0_i32_0 : i32, i32, i32
  }
}

</mosaic_0001>

<bundles_post_ra>
// kernel: stsgcm_forward.1
= control target key start
LH: loop header
LB: loop body
LE: loop exit
PB: predicated region body
PF: predicated region fallthrough
CT: control target
= control target key end

     0   :  { %s1019_s21 = smov 0   ;;  %s1141_s0 = inlined_call_operand.vmem [shape: bf16[2,48,48], index: 0, kind: input, shape index: {}]   ;;  %s1142_s1 = inlined_call_operand.vmem [shape: bf16[2,48,32], index: 1, kind: input, shape index: {}]   ;;  %s1143_s2 = inlined_call_operand.vmem [shape: bf16[32,64], index: 2, kind: input, shape index: {}]   ;;  %s1144_s3 = inlined_call_operand.vmem [shape: bf16[32,64], index: 3, kind: input, shape index: {}]   ;;  %s1145_s4 = inlined_call_operand.vmem [shape: f32[1,64], index: 4, kind: input, shape index: {}]   ;;  %s1146_s5 = inlined_call_operand.vmem [shape: f32[1,64], index: 5, kind: input, shape index: {}]   ;;  %s1147_s6 = inlined_call_operand.vmem [shape: f32[2,16,32], index: 6, kind: output, shape index: {}]  }
   0x1 LB: > { %s785_s22 = sadd.s32 4294967295, %s979_s21   ;;  %p789_p0 = scmp.ge.s32.totalorder %s979_s21, 1  ;;  %s979_s21 = sphi %s1019_s21, %s16_s21  }
   0x2   : > { %p222_p1 = scmp.lt.s32.totalorder %s979_s21, 3 }
   0x4   : > { %p223_p2 = pnand %p789_p0, %p222_p1 }
   0x5   : > { %p257_p3 = scmp.lt.s32.totalorder (!%p223_p2), %s785_s22, 1  ;;  %v981_v0 = vmov (!%p223_p2), 0.0   ;;  %vm982_vm0 = vmmov (!%p223_p2), 0   ;;  %v937_v1 = vld [vmem:[%s1143_s2] sm:$0xff] (!%p223_p2)   ;;  %vm318_vm1 = vcmask (!%p223_p2), 392192   ;;  %v938_v8 = vld [vmem:[%s1143_s2 + $0x8] sm:$0xff] (!%p223_p2)  }
   0x6   : > { %226 = sbr.rel (%p223_p2) target bundleno = 1211 (0x4bb), region = 44  ;;  %851 = vmatprep.subr.bf16.mxu0 (!%p223_p2), %v981_v0  ;;  %857 = vmatprep.mubr.msk.bf16.mxu0 (!%p223_p2), %vm982_vm0, %v981_v0  ;;  %vm411_vm2 = vcmask (!%p223_p2), 261120   ;;  %v803_v24 = vld [vmem:[%s1145_s4] ss:$0 sm:$0xff] (!%p223_p2)  ;;  %s983_s12 = smov (!%p223_p2), 96  }
   0x7   : > { %869 = vmatprep.subr.bf16.mxu1 (!%p223_p2), %v981_v0  ;;  %873 = vmatprep.mubr.msk.bf16.mxu1 (!%p223_p2), %vm982_vm0, %v981_v0 }
   0x8   : > { %870 = vmatpush3.bf16.msra.mxu1 (!%p223_p2), %v937_v1 }
   0x9   : > { %871 = vmatprep.subr.bf16.mxu1 (!%p223_p2), %v981_v0 }
   0xc   : > { %872 = vmatpush3.bf16.msra.mxu1 (!%p223_p2), %v938_v8 }
   0xd   : > { %s1149_s22 = smov (!%p257_p3, %s785_s22), 1  ;;  %885 = vmatprep.subr.bf16.mxu1 %v981_v0 }
   0xe   : > { %s919_s25 = smul.u32 24, %s1149_s22  ;;  %s828_s19 = sshll.u32 %s1149_s22, 4 }
   0xf   : > { %s271_s24 = scalar_lea.vmem %s1147_s6, %s828_s19 }
  0x10   : > { %s266_s28 = scalar_lea.vmem %s1142_s1, %s919_s25  ;;  %s261_s7 = scalar_lea.vmem %s1141_s0, %s919_s25 }
  0x11   : > { %v931_v2 = vld [vmem:[%s266_s28] sm:$0xff]   ;;  %v932_v3 = vld [vmem:[%s266_s28 + $0x8] sm:$0xff]   ;;  %v933_v4 = vld [vmem:[%s266_s28 + $0x10] sm:$0xff]  }
  0x12   : > { %852 = vmatpush3.bf16.msra.mxu0 %v931_v2  ;;  %v1048_v5 = vld [vmem:[%s261_s7] sm:$0xff]   ;;  %v1055_v6 = vld [vmem:[%s261_s7 + $0x8] sm:$0xff]   ;;  %v1061_v7 = vld [vmem:[%s261_s7 + $0x10] sm:$0xff]  }
  0x13   : > { %853 = vmatprep.subr.bf16.mxu0 %v981_v0 }
  0x16   : > { %854 = vmatpush3.bf16.msra.mxu0 %v932_v3 }
  0x17   : > { %855 = vmatprep.subr.bf16.mxu0 %v981_v0 }
  0x1a   : > { %856 = vmatpush3.bf16.msra.mxu0 %v933_v4  ;;  %v939_v4 = vld [vmem:[%s1144_s3] sm:$0xff]  }
  0x1b   : > { %903 = vmatprep.subr.bf16.mxu0 %v981_v0 }
  0x1d   : > { %858 = vmatmul.mubr.msk.bf16.vlgmr.msra.gmra.mrb[0].mxu0 %vm318_vm1, %v1048_v5 }
  0x1e   : > { %861 = vmatprep.mubr.msk.bf16.mxu0 %vm982_vm0, %v981_v0  ;;  %904 = vmatpush3.bf16.msra.mxu0 %v939_v4 }
  0x1f   : > { %905 = vmatprep.subr.bf16.mxu0 %v981_v0 }
  0x25   : > { %862 = vmatmul.mubr.msk.bf16.gmra.mrb[4].mxu0 %vm318_vm1, %v1055_v6 }
  0x26   : > { %865 = vmatprep.mubr.msk.bf16.mxu0 %vm982_vm0, %v981_v0 }
  0x2d   : > { %866 = vmatmul.mubr.msk.bf16.gmra.mrb[8].mxu0 %vm318_vm1, %v1061_v7 }
  0x2e   : > { %907 = vmatprep.mubr.msk.bf16.mxu0 %vm982_vm0, %v981_v0 }
  0xf0   : > { %v362_v9 = vpop.f32.mrb[0].mxu0 }
  0xf1   : > { %v859_v10 = vpop.f32.mrb[1].mxu0 }
  0xf2   : > { %v365_v11 = vpop.f32.mrb[2].mxu0 }
  0xf3   : > { %v385_v12 = vpack.c.bf16 %v365_v11, %v362_v9  ;;  %v860_v13 = vpop.f32.mrb[3].mxu0 }
  0xf5   : > { %874 = vmatmul.mubr.msk.bf16.vlgmr.msra.gmra.mrb[0].mxu1 %vm411_vm2, %v385_v12 }
  0xf6   : > { %877 = vmatprep.mubr.msk.bf16.mxu1 %vm982_vm0, %v981_v0 }
  0xf8   : > { %v370_v14 = vpop.f32.mrb[4].mxu0 }
  0xf9   : > { %v863_v15 = vpop.f32.mrb[5].mxu0 }
  0xfa   : > { %v373_v16 = vpop.f32.mrb[6].mxu0 }
  0xfb   : > { %v386_v17 = vpack.c.bf16 %v373_v16, %v370_v14  ;;  %v864_v18 = vpop.f32.mrb[7].mxu0 }
  0xfd   : > { %878 = vmatmul.mubr.msk.bf16.gmra.mrb[4].mxu1 %vm411_vm2, %v386_v17 }
  0xfe   : > { %881 = vmatprep.mubr.msk.bf16.mxu1 %vm982_vm0, %v981_v0 }
 0x100   : > { %v378_v19 = vpop.f32.mrb[8].mxu0 }
 0x101   : > { %v867_v20 = vpop.f32.mrb[9].mxu0 }
 0x102   : > { %v381_v21 = vpop.f32.mrb[10].mxu0 }
 0x103   : > { %v387_v22 = vpack.c.bf16 %v381_v21, %v378_v19  ;;  %v868_v23 = vpop.f32.mrb[11].mxu0 }
 0x104   : > { %v940_v23 = vld [vmem:[%s1144_s3 + $0x8] sm:$0xff]  }
 0x105   : > { %882 = vmatmul.mubr.msk.bf16.gmra.mrb[8].mxu1 %vm411_vm2, %v387_v22  ;;  %906 = vmatpush3.bf16.msra.mxu0 %v940_v23 }
 0x106   : > { %891 = vmatprep.mubr.msk.bf16.mxu1 %vm982_vm0, %v981_v0 }
 0x1c8   : > { %v455_v25 = vpop.f32.mrb[0].mxu1 }
 0x1c9   : > { %v1083_v26 = vadd.f32 %v803_v24, %v455_v25  ;;  %v875_v27 = vpop.f32.mrb[1].mxu1 }
 0x1ca   : > { %v458_v28 = vpop.f32.mrb[2].mxu1 }
 0x1cb   : > { %v809_v29 = vmul.f32 -1.442695, %v1083_v26  ;;  %v459_v30 = vadd.f32 %v803_v24, %v458_v28  ;;  %v876_v31 = vpop.f32.mrb[3].mxu1 }
 0x1cd   : > { %941 = vpow2.f32 %v809_v29  ;;  %v810_v32 = vmul.f32 -1.442695, %v459_v30 }
 0x1cf   : > { %943 = vpow2.f32 %v810_v32 }
 0x1d0   : > { %v463_v33 = vpop.f32.mrb[4].mxu1 }
 0x1d1   : > { %v464_v34 = vadd.f32 %v803_v24, %v463_v33  ;;  %v879_v35 = vpop.f32.mrb[5].mxu1 }
 0x1d2   : > { %v466_v36 = vpop.f32.mrb[6].mxu1 }
 0x1d3   : > { %v811_v37 = vmul.f32 -1.442695, %v464_v34  ;;  %v467_v38 = vadd.f32 %v803_v24, %v466_v36  ;;  %v880_v39 = vpop.f32.mrb[7].mxu1 }
 0x1d5   : > { %945 = vpow2.f32 %v811_v37  ;;  %v812_v40 = vmul.f32 -1.442695, %v467_v38 }
 0x1d7   : > { %v942_v41 = vpop.eup %941  ;;  %947 = vpow2.f32 %v812_v40  ;;  %v818_v40 = vld [vmem:[%s1146_s5] ss:$0 sm:$0xff] }
 0x1d8   : > { %v496_v42 = vadd.f32 1.0, %v942_v41  ;;  %v471_v43 = vpop.f32.mrb[8].mxu1 }
 0x1d9   : > { %v944_v44 = vpop.eup %943  ;;  %v472_v45 = vadd.f32 %v803_v24, %v471_v43  ;;  %v883_v46 = vpop.f32.mrb[9].mxu1 }
 0x1da   : > { %949 = vrcp.f32 %v496_v42  ;;  %v497_v47 = vadd.f32 1.0, %v944_v44  ;;  %v474_v48 = vpop.f32.mrb[10].mxu1 }
 0x1db   : > { %v813_v49 = vmul.f32 -1.442695, %v472_v45  ;;  %v475_v50 = vadd.f32 %v803_v24, %v474_v48  ;;  %v884_v51 = vpop.f32.mrb[11].mxu1 }
 0x1dd   : > { %951 = vpow2.f32 %v813_v49  ;;  %v814_v52 = vmul.f32 -1.442695, %v475_v50 }
 0x1de   : > { %953 = vrcp.f32 %v497_v47 }
 0x1df   : > { %v946_v53 = vpop.eup %945  ;;  %955 = vpow2.f32 %v814_v52 }
 0x1e0   : > { %v498_v54 = vadd.f32 1.0, %v946_v53 }
 0x1e1   : > { %v948_v55 = vpop.eup %947 }
 0x1e2   : > { %957 = vrcp.f32 %v498_v54  ;;  %v499_v56 = vadd.f32 1.0, %v948_v55 }
 0x1e4   : > { %v950_v57 = vpop.eup %949  ;;  %959 = vrcp.f32 %v499_v56 }
 0x1e5   : > { %520 = vrot.lane.b32.xlu0 %v950_v57, %s983_s12 }
 0x1e7   : > { %v952_v58 = vpop.eup %951 }
 0x1e8   : > { %v954_v59 = vpop.eup %953  ;;  %v500_v60 = vadd.f32 1.0, %v952_v58 }
 0x1e9   : > { %v956_v61 = vpop.eup %955  ;;  %522 = vrot.lane.b32.xlu0 %v954_v59, %s983_s12 }
 0x1ea   : > { %961 = vrcp.f32 %v500_v60  ;;  %v501_v62 = vadd.f32 1.0, %v956_v61 }
 0x1ec   : > { %v958_v63 = vpop.eup %957  ;;  %963 = vrcp.f32 %v501_v62 }
 0x1ed   : > { %524 = vrot.lane.b32.xlu1 %v958_v63, %s983_s12 }
 0x1ee   : > { %v960_v1 = vpop.eup %959 }
 0x1f1   : > { %526 = vrot.lane.b32.xlu1 %v960_v1, %s983_s12 }
 0x1f4   : > { %v962_v2 = vpop.eup %961 }
 0x1f5   : > { %528 = vrot.lane.b32.xlu0 %v962_v2, %s983_s12 }
 0x1f6   : > { %v964_v3 = vpop.eup %963 }
 0x1f7   : > { %530 = vrot.lane.b32.xlu1 %v964_v3, %s983_s12 }
 0x257   : > { %v521_v8 = vpop.permute.xlu0 %520 }
 0x258   : > { %v538_v10 = vmul.f32 %v521_v8, %v1083_v26 }
 0x25b   : > { %v523_v9 = vpop.permute.xlu0 %522 }
 0x25c   : > { %v539_v11 = vmul.f32 %v523_v9, %v459_v30 }
 0x25e   : > { %v544_v12 = vpack.c.bf16 %v539_v11, %v538_v10 }
 0x25f   : > { %v525_v13 = vpop.permute.xlu1 %524 }
 0x260   : > { %886 = vmatpush3.bf16.msra.mxu1 %v544_v12  ;;  %v1098_v15 = vmul.f32 %v525_v13, %v464_v34 }
 0x261   : > { %887 = vmatprep.subr.bf16.mxu1 %v981_v0 }
 0x263   : > { %v527_v14 = vpop.permute.xlu1 %526 }
 0x264   : > { %v1100_v16 = vmul.f32 %v527_v14, %v467_v38 }
 0x266   : > { %v545_v17 = vpack.c.bf16 %v1100_v16, %v1098_v15 }
 0x267   : > { %v529_v18 = vpop.permute.xlu0 %528 }
 0x268   : > { %888 = vmatpush3.bf16.msra.mxu1 %v545_v17  ;;  %v542_v20 = vmul.f32 %v529_v18, %v472_v45 }
 0x269   : > { %v531_v19 = vpop.permute.xlu1 %530  ;;  %889 = vmatprep.subr.bf16.mxu1 %v981_v0 }
 0x26a   : > { %v543_v21 = vmul.f32 %v531_v19, %v475_v50 }
 0x26c   : > { %v546_v22 = vpack.c.bf16 %v543_v21, %v542_v20 }
 0x26e   : > { %890 = vmatpush3.bf16.msra.mxu1 %v546_v22 }
 0x271   : > { %892 = vmatmul.mubr.msk.bf16.vlgmr.msra.gmra.mrb[12].mxu1 %vm318_vm1, %v1048_v5 }
 0x272   : > { %895 = vmatprep.mubr.msk.bf16.mxu1 %vm982_vm0, %v981_v0 }
 0x279   : > { %896 = vmatmul.mubr.msk.bf16.gmra.mrb[16].mxu1 %vm318_vm1, %v1055_v6 }
 0x27a   : > { %899 = vmatprep.mubr.msk.bf16.mxu1 %vm982_vm0, %v981_v0 }
 0x281   : > { %900 = vmatmul.mubr.msk.bf16.gmra.mrb[20].mxu1 %vm318_vm1, %v1061_v7 }
 0x344   : > { %v581_v24 = vpop.f32.mrb[12].mxu1 }
 0x345   : > { %v893_v25 = vpop.f32.mrb[13].mxu1 }
 0x346   : > { %v584_v5 = vpop.f32.mrb[14].mxu1 }
 0x347   : > { %v604_v26 = vpack.c.bf16 %v584_v5, %v581_v24  ;;  %v894_v27 = vpop.f32.mrb[15].mxu1 }
 0x349   : > { %908 = vmatmul.mubr.msk.bf16.vlgmr.msra.gmra.mrb[12].mxu0 %vm411_vm2, %v604_v26 }
 0x34a   : > { %911 = vmatprep.mubr.msk.bf16.mxu0 %vm982_vm0, %v981_v0 }
 0x34c   : > { %v589_v6 = vpop.f32.mrb[16].mxu1 }
 0x34d   : > { %v897_v28 = vpop.f32.mrb[17].mxu1 }
 0x34e   : > { %v592_v29 = vpop.f32.mrb[18].mxu1 }
 0x34f   : > { %v605_v30 = vpack.c.bf16 %v592_v29, %v589_v6  ;;  %v898_v7 = vpop.f32.mrb[19].mxu1 }
 0x351   : > { %912 = vmatmul.mubr.msk.bf16.gmra.mrb[16].mxu0 %vm411_vm2, %v605_v30 }
 0x352   : > { %915 = vmatprep.mubr.msk.bf16.mxu0 %vm982_vm0, %v981_v0 }
 0x354   : > { %v597_v31 = vpop.f32.mrb[20].mxu1 }
 0x355   : > { %v901_v32 = vpop.f32.mrb[21].mxu1 }
 0x356   : > { %v600_v33 = vpop.f32.mrb[22].mxu1 }
 0x357   : > { %v606_v34 = vpack.c.bf16 %v600_v33, %v597_v31  ;;  %v902_v35 = vpop.f32.mrb[23].mxu1 }
 0x359   : > { %916 = vmatmul.mubr.msk.bf16.gmra.mrb[20].mxu0 %vm411_vm2, %v606_v34 }
 0x41c   : > { %v673_v36 = vpop.f32.mrb[12].mxu0 }
 0x41d   : > { %v909_v37 = vpop.f32.mrb[13].mxu0 }
 0x41e   : > { %v675_v38 = vpop.f32.mrb[14].mxu0 }
 0x41f   : > { %v910_v39 = vpop.f32.mrb[15].mxu0 }
 0x424   : > { %v679_v41 = vpop.f32.mrb[16].mxu0 }
 0x425   : > { %v680_v42 = vadd.f32 %v818_v40, %v679_v41  ;;  %v913_v43 = vpop.f32.mrb[17].mxu0 }
 0x426   : > { %v682_v44 = vpop.f32.mrb[18].mxu0 }
 0x427   : > { %v824_v0 = vmul.f32 -1.442695, %v680_v42  ;;  %v683_v45 = vadd.f32 %v818_v40, %v682_v44  ;;  %v914_v46 = vpop.f32.mrb[19].mxu0 }
 0x429   : > { %965 = vpow2.f32 %v824_v0  ;;  %v825_v47 = vmul.f32 -1.442695, %v683_v45 }
 0x42b   : > { %967 = vpow2.f32 %v825_v47 }
 0x42c   : > { %v687_v48 = vpop.f32.mrb[20].mxu0 }
 0x42d   : > { %v917_v49 = vpop.f32.mrb[21].mxu0 }
 0x42e   : > { %v689_v50 = vpop.f32.mrb[22].mxu0 }
 0x42f   : > { %v918_v51 = vpop.f32.mrb[23].mxu0 }
 0x433   : > { %v966_v52 = vpop.eup %965 }
 0x434   : > { %v698_v53 = vadd.f32 1.0, %v966_v52 }
 0x435   : > { %v968_v54 = vpop.eup %967 }
 0x436   : > { %969 = vrcp.f32 %v698_v53  ;;  %v699_v55 = vadd.f32 1.0, %v968_v54 }
 0x438   : > { %971 = vrcp.f32 %v699_v55 }
 0x440   : > { %v970_v56 = vpop.eup %969 }
 0x441   : > { %706 = vrot.lane.b32.xlu0 %v970_v56, %s983_s12 }
 0x442   : > { %v972_v57 = vpop.eup %971 }
 0x443   : > { %708 = vrot.lane.b32.xlu1 %v972_v57, %s983_s12 }
 0x4b3   : > { %v707_v58 = vpop.permute.xlu0 %706 }
 0x4b4   : > { %v712_v59 = vmul.f32 %v707_v58, %v680_v42 }
 0x4b5   : > { %v709_v60 = vpop.permute.xlu1 %708 }
 0x4b6   : > { %v714_v61 = vmax.f32 %v1098_v15, %v712_v59  ;;  %v713_v62 = vmul.f32 %v709_v60, %v683_v45 }
 0x4b8   : > { %716 = vst.msk [vmem:[%s271_s24] sm:$0xff] %vm411_vm2, %v714_v61  ;;  %v715_v63 = vmax.f32 %v1100_v16, %v713_v62 }
 0x4ba   : > { %717 = vst.msk [vmem:[%s271_s24 + $0x8] sm:$0xff] %vm411_vm2, %v715_v63 }
 0x4bb PF: > { %s16_s21 = sadd.s32 1, %s979_s21  }
 0x4bc   : > { %p13_p4 = scmp.ge.s32.totalorder %s16_s21, 4  }
 0x4be   :  { %15 = sbr.rel (!%p13_p4) target bundleno = 1 (0x1), region = 77 }

</bundles_post_ra>
